<compile_context>
chip_gen: v7x
topology: tpu7x:2x2x1
jax: 0.10.0
libtpu: 0.0.40
codegen_flags: <defaults>
</compile_context>

<pallas_src>
import functools

import numpy as np
import jax
import jax.numpy as jnp
from jax import lax
from jax.experimental import pallas as pl
from jax.experimental.pallas import tpu as pltpu

# ---- module "args" (deterministic, in-script) -------------------------------
TEMPERATURE = 0.1
BASE_TEMPERATURE = 0.07
MAX_SAMPLES = 64
MAX_VIEWS = 16
IGNORE_LABEL = (0,)

_NEG_INF = -1e30                      # finite "minus infinity" (avoids inf-inf NaN)
_PAD_ROW_LABEL = -2                   # padded anchor rows
_PAD_COL_LABEL = -1                   # padded contrast columns

_SINGLE_SHOT_CAP = 2048               # max contrast cols handled in one invocation
_TILE_M_CAP = 2048                    # contrast tile width for the tiled path
_LOGITS_CACHE_BUDGET = 12 * 1024 * 1024   # bytes; safe on v5e/v6e/v7x
_VMEM_LIMIT = 32 * 1024 * 1024


def _round_up(x, m):
    return ((x + m - 1) // m) * m


# =============================================================================
# Pallas kernel 1: single-shot path (M fits one tile) — one grid step
# =============================================================================
def _contrastive_single_kernel(a_ref, c_ref, ya_ref, yc_ref, loss_ref, *,
                               temperature, base_temperature, n_valid):
    a = a_ref[...]                    # (n_pad, D)  bf16, already scaled by 1/T
    c = c_ref[...]                    # (m_pad, D)  bf16
    # a @ c.T on the MXU (bf16 inputs, f32 accumulation)
    logits = lax.dot_general(a, c, (((1,), (1,)), ((), ())),
                             preferred_element_type=jnp.float32)

    ya = ya_ref[...]                  # (n_pad, 1) int32
    yc = yc_ref[...]                  # (1, m_pad) int32
    valid_col = yc >= 0
    same = ya == yc
    row_ids = lax.broadcasted_iota(jnp.int32, logits.shape, 0)
    col_ids = lax.broadcasted_iota(jnp.int32, logits.shape, 1)
    pos = same & (row_ids != col_ids) & valid_col     # positives exclude self col
    neg = jnp.logical_not(same) & valid_col

    logits = jnp.where(valid_col, logits, _NEG_INF)
    m = jnp.max(logits, axis=1, keepdims=True)
    shifted = logits - m
    e = jnp.exp(shifted)
    neg_sum = jnp.sum(jnp.where(neg, e, 0.0), axis=1, keepdims=True)
    log_prob = shifted - jnp.log(e + neg_sum)

    pos_sum = jnp.sum(jnp.where(pos, log_prob, 0.0), axis=1, keepdims=True)
    cnt = jnp.maximum(jnp.sum(jnp.where(pos, 1.0, 0.0), axis=1, keepdims=True), 1.0)
    row_loss = -(temperature / base_temperature) * (pos_sum / cnt)   # (n_pad, 1)
    rvalid = lax.broadcasted_iota(jnp.int32, row_loss.shape, 0) < n_valid
    total = jnp.sum(jnp.where(rvalid, row_loss, 0.0), axis=0, keepdims=True)
    loss_ref[...] = total * (1.0 / n_valid)


# =============================================================================
# Pallas kernel 2: tiled two-pass path (large M), optional VMEM logits cache
#   grid = (2, n_tiles); pass 0 = online stats, pass 1 = log-prob accumulation
#   stat scratch (n_pad, 128): col 0 = running max, 1 = neg exp sum,
#                              col 2 = pos count,  3 = pos log-prob acc
# =============================================================================
def _tiled_body(a_ref, c_ref, ya_ref, yc_ref, loss_ref, stat_scr, cache_scr, *,
                temperature, base_temperature, n_valid, tile_m, use_cache):
    p = pl.program_id(0)              # 0 = stats pass, 1 = log-prob pass
    t = pl.program_id(1)              # M-tile index
    n_tiles = pl.num_programs(1)

    ya = ya_ref[...]                  # (n_pad, 1) int32, resident
    yc = yc_ref[...]                  # (1, tile_m) int32
    n_pad = ya.shape[0]

    valid_col = yc >= 0
    same = ya == yc                                          # (n_pad, tile_m)
    row_ids = lax.broadcasted_iota(jnp.int32, (n_pad, tile_m), 0)
    col_ids = lax.broadcasted_iota(jnp.int32, (n_pad, tile_m), 1) + t * tile_m
    pos = same & (row_ids != col_ids) & valid_col
    neg = jnp.logical_not(same) & valid_col

    def compute_logits():
        a = a_ref[...]                                       # (n_pad, D) bf16
        c = c_ref[...]                                       # (tile_m, D) bf16
        lg = lax.dot_general(a, c, (((1,), (1,)), ((), ())),
                             preferred_element_type=jnp.float32)
        return jnp.where(valid_col, lg, _NEG_INF)

    @pl.when((p == 0) & (t == 0))
    def _init():
        stat_scr[...] = jnp.zeros_like(stat_scr)
        stat_scr[:, 0:1] = jnp.full((n_pad, 1), _NEG_INF, dtype=stat_scr.dtype)

    @pl.when(p == 0)
    def _stats():
        logits = compute_logits()
        if use_cache:
            cache_scr[t] = logits                            # stash for pass 1
        m_old = stat_scr[:, 0:1]
        m_new = jnp.maximum(m_old, jnp.max(logits, axis=1, keepdims=True))
        scale = jnp.exp(m_old - m_new)
        e = jnp.exp(logits - m_new)
        stat_scr[:, 1:2] = stat_scr[:, 1:2] * scale + jnp.sum(
            jnp.where(neg, e, 0.0), axis=1, keepdims=True)
        stat_scr[:, 2:3] = stat_scr[:, 2:3] + jnp.sum(
            jnp.where(pos, 1.0, 0.0), axis=1, keepdims=True)
        stat_scr[:, 0:1] = m_new

    @pl.when(p == 1)
    def _logprob():
        if use_cache:
            logits = cache_scr[t]                            # no re-DMA / re-matmul
        else:
            logits = compute_logits()
        m_i = stat_scr[:, 0:1]                               # final row max
        neg_i = stat_scr[:, 1:2]                             # final neg exp-sum
        shifted = logits - m_i
        log_prob = shifted - jnp.log(jnp.exp(shifted) + neg_i)
        stat_scr[:, 3:4] = stat_scr[:, 3:4] + jnp.sum(
            jnp.where(pos, log_prob, 0.0), axis=1, keepdims=True)

    @pl.when((p == 1) & (t == n_tiles - 1))
    def _final():
        # guard rows with zero positives (would be NaN in the PyTorch reference)
        cnt = jnp.maximum(stat_scr[:, 2:3], 1.0)
        mean_log_prob_pos = stat_scr[:, 3:4] / cnt
        row_loss = -(temperature / base_temperature) * mean_log_prob_pos
        rvalid = lax.broadcasted_iota(jnp.int32, row_loss.shape, 0) < n_valid
        total = jnp.sum(jnp.where(rvalid, row_loss, 0.0), axis=0, keepdims=True)
        loss_ref[...] = total * (1.0 / n_valid)


# =============================================================================
# Wrapper around the two kernels
# =============================================================================
def contrastive_pallas(anchor_feat, contrast_feat, ya, yc,
                       temperature=TEMPERATURE,
                       base_temperature=BASE_TEMPERATURE,
                       *,
                       single_shot_cap=_SINGLE_SHOT_CAP,
                       tile_m_cap=_TILE_M_CAP,
                       cache_budget_bytes=_LOGITS_CACHE_BUDGET):
    """anchor_feat (N,D) f32, contrast_feat (M,D) f32, ya (N,), yc (M,) int."""
    n, d = anchor_feat.shape
    m = contrast_feat.shape[0]

    n_pad = _round_up(max(n, 8), 8)
    m_pad128 = _round_up(max(m, 128), 128)
    inv_t = 1.0 / float(temperature)

    # Fold 1/T into the tiny resident anchor matrix (f32 scale, then bf16).
    a = jnp.zeros((n_pad, d), jnp.bfloat16).at[:n].set(
        (anchor_feat.astype(jnp.float32) * inv_t).astype(jnp.bfloat16))
    ya_p = jnp.full((n_pad, 1), _PAD_ROW_LABEL, jnp.int32).at[:n, 0].set(
        ya.astype(jnp.int32))

    # ----------------------- single-shot fast path --------------------------
    if m_pad128 <= single_shot_cap:
        m_pad = m_pad128
        # TODO(synk): a persistent memory bank could be stored pre-padded to
        # avoid this per-call pad copy; contrast stays (M, D) — no transpose.
        c = jnp.zeros((m_pad, d), jnp.bfloat16).at[:m].set(
            contrast_feat.astype(jnp.bfloat16))
        yc_p = jnp.full((1, m_pad), _PAD_COL_LABEL, jnp.int32).at[0, :m].set(
            yc.astype(jnp.int32))
        kernel = functools.partial(
            _contrastive_single_kernel,
            temperature=float(temperature),
            base_temperature=float(base_temperature), n_valid=int(n))
        out = pl.pallas_call(
            kernel,
            out_shape=jax.ShapeDtypeStruct((1, 1), jnp.float32),
            grid=(1,),
            in_specs=[
                pl.BlockSpec((n_pad, d), lambda i: (0, 0)),
                pl.BlockSpec((m_pad, d), lambda i: (0, 0)),
                pl.BlockSpec((n_pad, 1), lambda i: (0, 0)),
                pl.BlockSpec((1, m_pad), lambda i: (0, 0)),
            ],
            out_specs=pl.BlockSpec((1, 1), lambda i: (0, 0)),
            compiler_params=pltpu.CompilerParams(
                dimension_semantics=("arbitrary",),
                vmem_limit_bytes=_VMEM_LIMIT),
        )(a, c, ya_p, yc_p)
        return out[0, 0]

    # ----------------------- tiled two-pass path ----------------------------
    n_tiles = -(-m_pad128 // tile_m_cap)                       # ceil div
    tile_m = _round_up(-(-m_pad128 // n_tiles), 128)           # even-ish split
    m_pad = n_tiles * tile_m                                   # waste < n_tiles*128
    use_cache = (n_pad * m_pad * 4) <= cache_budget_bytes

    c = jnp.zeros((m_pad, d), jnp.bfloat16).at[:m].set(
        contrast_feat.astype(jnp.bfloat16))
    yc_p = jnp.full((1, m_pad), _PAD_COL_LABEL, jnp.int32).at[0, :m].set(
        yc.astype(jnp.int32))

    kw = dict(temperature=float(temperature),
              base_temperature=float(base_temperature),
              n_valid=int(n), tile_m=int(tile_m))

    if use_cache:
        def kernel(a_r, c_r, ya_r, yc_r, loss_r, stat_r, cache_r):
            _tiled_body(a_r, c_r, ya_r, yc_r, loss_r, stat_r, cache_r,
                        use_cache=True, **kw)
        scratch = [pltpu.VMEM((n_pad, 128), jnp.float32),
                   pltpu.VMEM((n_tiles, n_pad, tile_m), jnp.float32)]
        # pass 1 reads the cache, so keep the contrast block index constant
        # there (no re-DMA of the memory bank on the second sweep).
        c_index_map = lambda p, t: (t * (1 - p), 0)
    else:
        def kernel(a_r, c_r, ya_r, yc_r, loss_r, stat_r):
            _tiled_body(a_r, c_r, ya_r, yc_r, loss_r, stat_r, None,
                        use_cache=False, **kw)
        scratch = [pltpu.VMEM((n_pad, 128), jnp.float32)]
        c_index_map = lambda p, t: (t, 0)

    out = pl.pallas_call(
        kernel,
        out_shape=jax.ShapeDtypeStruct((1, 1), jnp.float32),
        grid=(2, n_tiles),
        in_specs=[
            pl.BlockSpec((n_pad, d), lambda p, t: (0, 0)),     # anchors: resident
            pl.BlockSpec((tile_m, d), c_index_map),            # contrast (M,D) tile
            pl.BlockSpec((n_pad, 1), lambda p, t: (0, 0)),     # anchor labels
            pl.BlockSpec((1, tile_m), lambda p, t: (0, t)),    # contrast labels
        ],
        out_specs=pl.BlockSpec((1, 1), lambda p, t: (0, 0)),
        scratch_shapes=scratch,
        compiler_params=pltpu.CompilerParams(
            dimension_semantics=("arbitrary", "arbitrary"),
            vmem_limit_bytes=_VMEM_LIMIT),
    )(a, c, ya_p, yc_p)
    return out[0, 0]


# =============================================================================
# Host-side glue (mirrors PyTorch semantics); only indices go to host
# =============================================================================
def _hard_anchor_sampling_indices(y_hat, y, *, max_samples, max_views,
                                  ignore_label, rng):
    # data-dependent shapes, unique/nonzero/randperm -> host numpy glue
    y_hat = np.asarray(y_hat)
    y = np.asarray(y)
    batch_size = y_hat.shape[0]

    classes, total_classes = [], 0
    for ii in range(batch_size):
        this_y = y_hat[ii]
        this_classes = [c for c in np.unique(this_y) if c not in ignore_label]
        this_classes = [c for c in this_classes
                        if int((this_y == c).sum()) > max_views]
        classes.append(this_classes)
        total_classes += len(this_classes)

    if total_classes == 0:
        return None, None, None

    n_view = min(max_samples // total_classes, max_views)

    b_idx = np.zeros((total_classes, n_view), np.int32)
    p_idx = np.zeros((total_classes, n_view), np.int32)
    y_ = np.zeros((total_classes,), np.int32)
    ptr = 0
    for ii in range(batch_size):
        this_y_hat, this_y = y_hat[ii], y[ii]
        for cls_id in classes[ii]:
            hard = np.nonzero((this_y_hat == cls_id) & (this_y != cls_id))[0]
            easy = np.nonzero((this_y_hat == cls_id) & (this_y == cls_id))[0]
            num_hard, num_easy = hard.shape[0], easy.shape[0]
            if num_hard >= n_view / 2 and num_easy >= n_view / 2:
                num_hard_keep = n_view // 2
                num_easy_keep = n_view - num_hard_keep
            elif num_hard >= n_view / 2:
                num_easy_keep = num_easy
                num_hard_keep = n_view - num_easy_keep
            elif num_easy >= n_view / 2:
                num_hard_keep = num_hard
                num_easy_keep = n_view - num_hard_keep
            else:
                raise Exception("this should never be touched! "
                                f"{num_hard} {num_easy} {n_view}")
            hard = hard[rng.permutation(num_hard)[:num_hard_keep]]
            easy = easy[rng.permutation(num_easy)[:num_easy_keep]]
            idx = np.concatenate([hard, easy], axis=0)
            b_idx[ptr] = ii
            p_idx[ptr] = idx
            y_[ptr] = int(cls_id)
            ptr += 1
    return jnp.asarray(b_idx), jnp.asarray(p_idx), jnp.asarray(y_)


def _sample_negative(queue):
    # reference leaves the last cache_size rows zero-featured with label 0
    class_num, cache_size, feat_size = queue.shape
    X_ = jnp.concatenate(
        [queue[1:].reshape((class_num - 1) * cache_size, feat_size).astype(jnp.float32),
         jnp.zeros((cache_size, feat_size), jnp.float32)], axis=0)
    y_ = jnp.concatenate(
        [jnp.repeat(jnp.arange(1, class_num, dtype=jnp.int32), cache_size),
         jnp.zeros((cache_size,), jnp.int32)], axis=0)
    return X_, y_


def _prepare_anchors(feats, labels, predict, *, rng):
    B, C, H, W = feats.shape
    # nearest interpolation of labels to feature resolution (F.interpolate 'nearest')
    H0, W0 = labels.shape[1], labels.shape[2]
    ri = (jnp.arange(H) * H0) // H
    ci = (jnp.arange(W) * W0) // W
    labels_i = labels[:, ri][:, :, ci].astype(jnp.int32)

    labels_flat = labels_i.reshape(B, -1)
    predict_flat = predict.reshape(B, -1).astype(jnp.int32)
    feats_nld = jnp.transpose(feats, (0, 2, 3, 1)).reshape(B, -1, C)

    b_idx, p_idx, y_ = _hard_anchor_sampling_indices(
        labels_flat, predict_flat, max_samples=MAX_SAMPLES, max_views=MAX_VIEWS,
        ignore_label=IGNORE_LABEL, rng=rng)
    if b_idx is None:
        return None, None

    # device-side gather of sampled anchor features (features never go to host)
    X_ = feats_nld[b_idx, p_idx]                       # (anchor_num, n_view, C)
    anchor_num, n_view, D = X_.shape
    # torch.cat(torch.unbind(X_anchor, dim=1), dim=0) -> view-major concat
    anchor_feature = jnp.transpose(X_, (1, 0, 2)).reshape(n_view * anchor_num, D)
    ya = jnp.tile(y_, n_view)
    return anchor_feature, ya


def pixel_contrast_loss_mem(feats, labels, predict, queue=None, *, rng):
    """Forward pass of PixelContrastLoss_mem."""
    anchor_feature, ya = _prepare_anchors(feats, labels, predict, rng=rng)
    if anchor_feature is None:
        # TODO(synk): PyTorch would call _contrastive(None, ...) and crash here.
        return jnp.zeros((), jnp.float32)

    if queue is not None:
        contrast_feature, yc = _sample_negative(queue)     # contrast_count = 1
    else:
        contrast_feature, yc = anchor_feature, ya          # contrast_count = n_view

    return contrastive_pallas(anchor_feature, contrast_feature, ya, yc)


# =============================================================================
# Dense pure-JAX reference of the _contrastive hot path (for verification)
# =============================================================================
def _contrastive_reference(anchor, contrast, ya, yc,
                           temperature=TEMPERATURE, base_temperature=BASE_TEMPERATURE):
    inv_t = 1.0 / temperature
    a = (anchor.astype(jnp.float32) * inv_t).astype(jnp.bfloat16).astype(jnp.float32)
    c = contrast.astype(jnp.bfloat16).astype(jnp.float32)
    logits = a @ c.T
    logits = logits - jnp.max(logits, axis=1, keepdims=True)
    mask = (ya[:, None] == yc[None, :]).astype(jnp.float32)
    neg_mask = 1.0 - mask
    n, m = logits.shape
    logits_mask = 1.0 - (jnp.arange(n)[:, None] == jnp.arange(m)[None, :]).astype(jnp.float32)
    mask = mask * logits_mask
    exp_logits = jnp.exp(logits)
    neg_sum = jnp.sum(exp_logits * neg_mask, axis=1, keepdims=True)
    log_prob = logits - jnp.log(exp_logits + neg_sum)
    mean_log_prob_pos = jnp.sum(mask * log_prob, axis=1) / jnp.maximum(jnp.sum(mask, axis=1), 1.0)
    return jnp.mean(-(temperature / base_temperature) * mean_log_prob_pos)


# =============================================================================
# Example run
# =============================================================================
if __name__ == "__main__":
    key = jax.random.PRNGKey(0)
    B, C, H, W = 2, 32, 16, 16
    k1, k2 = jax.random.split(key)

    # L2-normalized embeddings (as produced by the projection head in practice)
    feats = jax.random.normal(k1, (B, C, H, W), jnp.float32)
    feats = feats / (jnp.linalg.norm(feats, axis=1, keepdims=True) + 1e-12)

    # 4 classes, each occupying 64 contiguous pixels at feature resolution
    base = (jnp.arange(H * W) // (H * W // 4)).astype(jnp.int32)        # (256,)
    labels_feat = base.reshape(H, W)
    labels_img = jnp.repeat(jnp.repeat(labels_feat, 2, axis=0), 2, axis=1)
    labels = jnp.broadcast_to(labels_img, (B, 2 * H, 2 * W))            # (B, 32, 32)

    # predict: same as labels except last 20 pixels of each class block shifted
    pred_flat = np.array(base)
    for cc in range(4):
        s = cc * 64
        pred_flat[s + 44: s + 64] = (cc + 1) % 4
    predict = jnp.broadcast_to(jnp.asarray(pred_flat).reshape(H, W), (B, H, W))
    predict = predict.astype(jnp.int32)

    # memory queue: (class_num, cache_size, feat_dim), normalized entries
    queue = jax.random.normal(k2, (4, 24, C), jnp.float32)
    queue = queue / (jnp.linalg.norm(queue, axis=-1, keepdims=True) + 1e-12)

    loss_no_queue = pixel_contrast_loss_mem(feats, labels, predict, queue=None,
                                            rng=np.random.RandomState(0))
    loss_queue = pixel_contrast_loss_mem(feats, labels, predict, queue=queue,
                                         rng=np.random.RandomState(0))
    jax.block_until_ready(loss_no_queue)
    jax.block_until_ready(loss_queue)
    assert np.isfinite(np.asarray(loss_no_queue)), loss_no_queue
    assert np.isfinite(np.asarray(loss_queue)), loss_queue

    # cross-check the single-shot path against a dense pure-JAX reference
    anchor_feature, ya = _prepare_anchors(feats, labels, predict,
                                          rng=np.random.RandomState(0))
    ref_no_queue = _contrastive_reference(anchor_feature, anchor_feature, ya, ya)
    Xc, yc = _sample_negative(queue)
    ref_queue = _contrastive_reference(anchor_feature, Xc, ya, yc)
    np.testing.assert_allclose(np.asarray(loss_no_queue), np.asarray(ref_no_queue),
                               rtol=2e-2, atol=2e-3)
    np.testing.assert_allclose(np.asarray(loss_queue), np.asarray(ref_queue),
                               rtol=2e-2, atol=2e-3)

    # tiled-path check: a larger synthetic memory bank forces multiple M tiles
    # and exercises both the VMEM logits cache and the recompute fallback.
    ka, kc, kl1, kl2 = jax.random.split(jax.random.PRNGKey(1), 4)
    at = jax.random.normal(ka, (60, C), jnp.float32)
    at = at / (jnp.linalg.norm(at, axis=-1, keepdims=True) + 1e-12)
    ct = jax.random.normal(kc, (1000, C), jnp.float32)
    ct = ct / (jnp.linalg.norm(ct, axis=-1, keepdims=True) + 1e-12)
    yat = jax.random.randint(kl1, (60,), 1, 5).astype(jnp.int32)
    yct = jax.random.randint(kl2, (1000,), 1, 5).astype(jnp.int32)
    ref_tiled = _contrastive_reference(at, ct, yat, yct)
    out_cache = contrastive_pallas(at, ct, yat, yct,
                                   single_shot_cap=0, tile_m_cap=256)
    out_nocache = contrastive_pallas(at, ct, yat, yct,
                                     single_shot_cap=0, tile_m_cap=256,
                                     cache_budget_bytes=0)
    jax.block_until_ready(out_cache)
    jax.block_until_ready(out_nocache)
    np.testing.assert_allclose(np.asarray(out_cache), np.asarray(ref_tiled),
                               rtol=2e-2, atol=2e-3)
    np.testing.assert_allclose(np.asarray(out_nocache), np.asarray(ref_tiled),
                               rtol=2e-2, atol=2e-3)

    print("KERNEL_OK")
</pallas_src>

<mosaic_0001>
module attributes {stable_mosaic.version = 11 : i64} {
  func.func @_contrastive_single_kernel(%arg0: i32, %arg1: memref<64x32xbf16, #tpu.memory_space<vmem>>, %arg2: memref<128x32xbf16, #tpu.memory_space<vmem>>, %arg3: memref<64x1xi32, #tpu.memory_space<vmem>>, %arg4: memref<1x128xi32, #tpu.memory_space<vmem>>, %arg5: memref<1x1xf32, #tpu.memory_space<vmem>>) attributes {dimension_semantics = [#tpu.dimension_semantics<arbitrary>], iteration_bounds = array<i64: 1>, scalar_prefetch = 0 : i64, scratch_operands = 0 : i64, tpu.core_type = #tpu.core_type<tc>, window_params = [{pipeline_mode = #tpu.pipeline_mode<synchronous>, transform_indices = @transform_0, window_bounds = array<i64: 64, 32>}, {pipeline_mode = #tpu.pipeline_mode<synchronous>, transform_indices = @transform_1, window_bounds = array<i64: 128, 32>}, {pipeline_mode = #tpu.pipeline_mode<synchronous>, transform_indices = @transform_2, window_bounds = array<i64: 64, 1>}, {pipeline_mode = #tpu.pipeline_mode<synchronous>, transform_indices = @transform_3, window_bounds = array<i64: 1, 128>}, {pipeline_mode = #tpu.pipeline_mode<synchronous>, transform_indices = @transform_4, window_bounds = array<i64: 1, 1>}]} {
    %c0 = arith.constant 0 : index
    %c0_0 = arith.constant 0 : index
    %0 = vector.load %arg1[%c0, %c0_0] : memref<64x32xbf16, #tpu.memory_space<vmem>>, vector<64x32xbf16>
    %c0_1 = arith.constant 0 : index
    %c0_2 = arith.constant 0 : index
    %1 = vector.load %arg2[%c0_1, %c0_2] : memref<128x32xbf16, #tpu.memory_space<vmem>>, vector<128x32xbf16>
    %cst = arith.constant dense<0.000000e+00> : vector<64x128xf32>
    %2 = tpu.matmul %0, %1, %cst {dimension_numbers = #tpu.dot_dimension_numbers<[1], [1], [0], [0], [0, 0, 1, 0], [], []>} : vector<64x32xbf16>, vector<128x32xbf16>, vector<64x128xf32> -> vector<64x128xf32>
    %c0_3 = arith.constant 0 : index
    %c0_4 = arith.constant 0 : index
    %3 = vector.load %arg3[%c0_3, %c0_4] : memref<64x1xi32, #tpu.memory_space<vmem>>, vector<64x1xi32>
    %c0_5 = arith.constant 0 : index
    %c0_6 = arith.constant 0 : index
    %4 = vector.load %arg4[%c0_5, %c0_6] : memref<1x128xi32, #tpu.memory_space<vmem>>, vector<1x128xi32>
    %c0_i32 = arith.constant 0 : i32
    %5 = vector.broadcast %c0_i32 : i32 to vector<1x128xi32>
    %6 = arith.cmpi sge, %4, %5 : vector<1x128xi32>
    %7 = vector.broadcast %3 : vector<64x1xi32> to vector<64x128xi32>
    %8 = vector.broadcast %4 : vector<1x128xi32> to vector<64x128xi32>
    %9 = arith.cmpi eq, %7, %8 : vector<64x128xi32>
    %10 = tpu.iota {dimensions = array<i32: 0>} : vector<64x128xi32>
    %11 = tpu.iota {dimensions = array<i32: 1>} : vector<64x128xi32>
    %12 = arith.cmpi ne, %10, %11 : vector<64x128xi32>
    %13 = arith.andi %9, %12 : vector<64x128xi1>
    %14 = vector.broadcast %6 : vector<1x128xi1> to vector<64x128xi1>
    %15 = arith.andi %13, %14 : vector<64x128xi1>
    %cst_7 = arith.constant dense<true> : vector<64x128xi1>
    %16 = arith.xori %9, %cst_7 : vector<64x128xi1>
    %17 = vector.broadcast %6 : vector<1x128xi1> to vector<64x128xi1>
    %18 = arith.andi %16, %17 : vector<64x128xi1>
    %cst_8 = arith.constant -1.000000e+30 : f32
    %19 = vector.shape_cast %6 : vector<1x128xi1> to vector<1x128xi1>
    %20 = vector.broadcast %19 : vector<1x128xi1> to vector<64x128xi1>
    %21 = vector.broadcast %cst_8 : f32 to vector<64x128xf32>
    %22 = arith.select %20, %2, %21 : vector<64x128xi1>, vector<64x128xf32>
    %cst_9 = arith.constant dense<0xFF800000> : vector<64xf32>
    %23 = vector.multi_reduction <maximumf>, %22, %cst_9 [1] : vector<64x128xf32> to vector<64xf32>
    %24 = vector.shape_cast %23 : vector<64xf32> to vector<64x1xf32>
    %25 = vector.broadcast %24 : vector<64x1xf32> to vector<64x128xf32>
    %26 = arith.subf %22, %25 : vector<64x128xf32>
    %27 = math.exp %26 : vector<64x128xf32>
    %cst_10 = arith.constant 0.000000e+00 : f32
    %28 = vector.broadcast %cst_10 : f32 to vector<64x128xf32>
    %29 = arith.select %18, %27, %28 : vector<64x128xi1>, vector<64x128xf32>
    %cst_11 = arith.constant dense<0.000000e+00> : vector<64xf32>
    %30 = vector.multi_reduction <add>, %29, %cst_11 [1] : vector<64x128xf32> to vector<64xf32>
    %31 = vector.shape_cast %30 : vector<64xf32> to vector<64x1xf32>
    %32 = vector.broadcast %31 : vector<64x1xf32> to vector<64x128xf32>
    %33 = arith.addf %27, %32 : vector<64x128xf32>
    %34 = math.log %33 : vector<64x128xf32>
    %35 = arith.subf %26, %34 : vector<64x128xf32>
    %cst_12 = arith.constant 0.000000e+00 : f32
    %36 = vector.broadcast %cst_12 : f32 to vector<64x128xf32>
    %37 = arith.select %15, %35, %36 : vector<64x128xi1>, vector<64x128xf32>
    %cst_13 = arith.constant dense<0.000000e+00> : vector<64xf32>
    %38 = vector.multi_reduction <add>, %37, %cst_13 [1] : vector<64x128xf32> to vector<64xf32>
    %39 = vector.shape_cast %38 : vector<64xf32> to vector<64x1xf32>
    %cst_14 = arith.constant 1.000000e+00 : f32
    %cst_15 = arith.constant 0.000000e+00 : f32
    %40 = vector.broadcast %cst_14 : f32 to vector<64x128xf32>
    %41 = vector.broadcast %cst_15 : f32 to vector<64x128xf32>
    %42 = arith.select %15, %40, %41 : vector<64x128xi1>, vector<64x128xf32>
    %cst_16 = arith.constant dense<0.000000e+00> : vector<64xf32>
    %43 = vector.multi_reduction <add>, %42, %cst_16 [1] : vector<64x128xf32> to vector<64xf32>
    %44 = vector.shape_cast %43 : vector<64xf32> to vector<64x1xf32>
    %cst_17 = arith.constant 1.000000e+00 : f32
    %45 = vector.broadcast %cst_17 : f32 to vector<64x1xf32>
    %46 = arith.maximumf %44, %45 : vector<64x1xf32>
    %47 = arith.divf %39, %46 : vector<64x1xf32>
    %cst_18 = arith.constant -1.42857146 : f32
    %48 = vector.broadcast %cst_18 : f32 to vector<64x1xf32>
    %49 = arith.mulf %48, %47 : vector<64x1xf32>
    %50 = tpu.iota {dimensions = array<i32: 0>} : vector<64x1xi32>
    %c60_i32 = arith.constant 60 : i32
    %51 = vector.broadcast %c60_i32 : i32 to vector<64x1xi32>
    %52 = arith.cmpi slt, %50, %51 : vector<64x1xi32>
    %cst_19 = arith.constant 0.000000e+00 : f32
    %53 = vector.broadcast %cst_19 : f32 to vector<64x1xf32>
    %54 = arith.select %52, %49, %53 : vector<64x1xi1>, vector<64x1xf32>
    %cst_20 = arith.constant dense<0.000000e+00> : vector<1xf32>
    %55 = vector.multi_reduction <add>, %54, %cst_20 [0] : vector<64x1xf32> to vector<1xf32>
    %56 = vector.shape_cast %55 : vector<1xf32> to vector<1x1xf32>
    %cst_21 = arith.constant 0.0166666675 : f32
    %57 = vector.broadcast %cst_21 : f32 to vector<1x1xf32>
    %58 = arith.mulf %56, %57 : vector<1x1xf32>
    %c0_22 = arith.constant 0 : index
    %c0_23 = arith.constant 0 : index
    %59 = vector.load %arg5[%c0_22, %c0_23] : memref<1x1xf32, #tpu.memory_space<vmem>>, vector<1x1xf32>
    tpu.vector_store %arg5[%c0_22, %c0_23], %58 {strides = array<i32>} : memref<1x1xf32, #tpu.memory_space<vmem>>, vector<1x1xf32>,
    return
  }
  func.func @transform_0(%arg0: i32) -> (i32, i32) {
    %c0_i32 = arith.constant 0 : i32
    %c0_i32_0 = arith.constant 0 : i32
    %c0_i32_1 = arith.constant 0 : i32
    return %c0_i32, %c0_i32_0 : i32, i32
  }
  func.func @transform_1(%arg0: i32) -> (i32, i32) {
    %c0_i32 = arith.constant 0 : i32
    %c0_i32_0 = arith.constant 0 : i32
    %c0_i32_1 = arith.constant 0 : i32
    return %c0_i32, %c0_i32_0 : i32, i32
  }
  func.func @transform_2(%arg0: i32) -> (i32, i32) {
    %c0_i32 = arith.constant 0 : i32
    %c0_i32_0 = arith.constant 0 : i32
    %c0_i32_1 = arith.constant 0 : i32
    return %c0_i32, %c0_i32_0 : i32, i32
  }
  func.func @transform_3(%arg0: i32) -> (i32, i32) {
    %c0_i32 = arith.constant 0 : i32
    %c0_i32_0 = arith.constant 0 : i32
    %c0_i32_1 = arith.constant 0 : i32
    return %c0_i32, %c0_i32_0 : i32, i32
  }
  func.func @transform_4(%arg0: i32) -> (i32, i32) {
    %c0_i32 = arith.constant 0 : i32
    %c0_i32_0 = arith.constant 0 : i32
    %c0_i32_1 = arith.constant 0 : i32
    return %c0_i32, %c0_i32_0 : i32, i32
  }
}

</mosaic_0001>

<bundles_post_ra>
// kernel: tpu_custom_call.1
= control target key start
LH: loop header
LB: loop body
LE: loop exit
PB: predicated region body
PF: predicated region fallthrough
CT: control target
= control target key end

     0   :  { %vm103_vm0 = vcmask 261120   ;;  %s1132_s0 = inlined_call_operand.vmem [shape: bf16[64,32], index: 0, kind: input, shape index: {}]   ;;  %s1133_s1 = inlined_call_operand.vmem [shape: bf16[128,32], index: 1, kind: input, shape index: {}]   ;;  %s1134_s2 = inlined_call_operand.vmem [shape: s32[64,1], index: 2, kind: input, shape index: {}]   ;;  %s1135_s3 = inlined_call_operand.vmem [shape: s32[1,128], index: 3, kind: input, shape index: {}]   ;;  %s1136_s4 = inlined_call_operand.hbm [shape: f32[1,1], index: 4, kind: output, shape index: {}]  }
   0x1   :  { %v628_v0 = vld [vmem:[%s1133_s1] sm:$0xff]   ;;  %v629_v1 = vld [vmem:[%s1133_s1 + $0x8] sm:$0xff]   ;;  %v630_v3 = vld [vmem:[%s1133_s1 + $0x10] sm:$0xff]  }
   0x2   :  { %606 = vmatprep.subr.msk.bf16.mxu0 %vm103_vm0, %v628_v0  ;;  %607 = vmatprep.subr.msk.bf16.mxu1 %vm103_vm0, %v628_v0  ;;  %v117_v2 = vsel %vm103_vm0, %v628_v0, 0  ;;  %v120_v4 = vsel %vm103_vm0, %v629_v1, 0  ;;  %v636_v5 = vld [vmem:[%s1132_s0] sm:$0xff]   ;;  %v637_v6 = vld [vmem:[%s1132_s0 + $0x10] sm:$0xff]  }
   0x3   :  { %567 = vmatpush3.bf16.xpose.msra.mxu0 %v117_v2  ;;  %598 = vmatpush3.bf16.xpose.msra.mxu1 %v117_v2 }
   0x4   :  { %608 = vmatprep.subr.msk.bf16.mxu0 %vm103_vm0, %v629_v1  ;;  %609 = vmatprep.subr.msk.bf16.mxu1 %vm103_vm0, %v629_v1 }
   0x5   :  { %582 = vmatprep.mubr.msk.bf16.mxu0 %vm103_vm0, %v636_v5 }
   0xb   :  { %569 = vmatpush3.bf16.xpose.msra.mxu0 %v120_v4  ;;  %599 = vmatpush3.bf16.xpose.msra.mxu1 %v120_v4 }
   0xc   :  { %610 = vmatprep.subr.msk.bf16.mxu0 %vm103_vm0, %v630_v3  ;;  %611 = vmatprep.subr.msk.bf16.mxu1 %vm103_vm0, %v630_v3 }
   0xd   :  { %9 = vsyncpa [#allocation3], 0  ;;  %586 = vmatprep.mubr.msk.bf16.mxu1 %vm103_vm0, %v637_v6  ;;  %v123_v7 = vsel %vm103_vm0, %v630_v3, 0  ;;  %v631_v8 = vld [vmem:[%s1133_s1 + $0x18] sm:$0xff]   ;;  %v632_v10 = vld [vmem:[%s1133_s1 + $0x20] sm:$0xff]   ;;  %v712_v20 = vmov 0   ;;  %v239_v21 = vlaneseq }
   0xe   :  { %v126_v9 = vsel %vm103_vm0, %v631_v8, 0  ;;  %v129_v11 = vsel %vm103_vm0, %v632_v10, 0  ;;  %v633_v12 = vld [vmem:[%s1133_s1 + $0x28] sm:$0xff]   ;;  %v634_v14 = vld [vmem:[%s1133_s1 + $0x30] sm:$0xff]   ;;  %v635_v16 = vld [vmem:[%s1133_s1 + $0x38] sm:$0xff]   ;;  %627 = vset.pattern.permute.xlu1 %v712_v20  ;;  %626 = vset.pattern.permute.xlu0 %v712_v20  ;;  %vm713_vm5 = vmmov 1  }
   0xf   :  { %v132_v13 = vsel %vm103_vm0, %v633_v12, 0  ;;  %v135_v15 = vsel %vm103_vm0, %v634_v14, 0  ;;  %v138_v17 = vsel %vm103_vm0, %v635_v16, 0  ;;  %v638_v18 = vld [vmem:[%s1132_s0 + $0x8] sm:$0xff]   ;;  %v639_v19 = vld [vmem:[%s1132_s0 + $0x18] sm:$0xff]   ;;  %v809_v23 = vshrl.u32 %v239_v21, 7 }
  0x10   :  { %v213_v22 = vld [vmem:[%s1135_s3] sm:$0x1]  ;;  %v206_v42 = vld [vmem:[%s1134_s2 + $0x8] sm:$0xff]  ;;  %v207_v43 = vld [vmem:[%s1134_s2 + $0x10] sm:$0xff] }
  0x11   :  { %vm214_vm1 = vcmp.ge.s32.totalorder %v213_v22, 0  ;;  %v241_v24 = vsub.s32 0, %v809_v23  ;;  %v208_v44 = vld [vmem:[%s1134_s2 + $0x18] sm:$0xff]  ;;  %v205_v45 = vld [vmem:[%s1134_s2] sm:$0xff]  ;;  %v210_v47 = vld [vmem:[%s1134_s2 + $0x28] sm:$0xff] }
  0x12   :  { %v278_v25 = vsel %vm214_vm1, 1, %v712_v20  ;;  %v209_v46 = vld [vmem:[%s1134_s2 + $0x20] sm:$0xff]  ;;  %v211_v48 = vld [vmem:[%s1134_s2 + $0x30] sm:$0xff]  ;;  %v212_v50 = vld [vmem:[%s1134_s2 + $0x38] sm:$0xff]  ;;  %s715_s2 = smov [#allocation2]  }
  0x13   :  { %571 = vmatpush3.bf16.xpose.msra.mxu0 %v123_v7  ;;  %600 = vmatpush3.bf16.xpose.msra.mxu1 %v123_v7  ;;  %v812_v26 = vrot.slane %v278_v25, %v241_v24  ;;  %v874_v0 = vrot.slane %v213_v22, %v241_v24  ;;  %s530_s28 = sshll.u32 %s715_s2, 4  ;;  %s531_s28 = int_to_ptr.vmem [resolvable:$true] %s530_s28 }
  0x14   :  { %612 = vmatprep.subr.msk.bf16.mxu0 %vm103_vm0, %v631_v8  ;;  %613 = vmatprep.subr.msk.bf16.mxu1 %vm103_vm0, %v631_v8  ;;  %s688_s29 = scalar_lea.vmem %s531_s28, 16  ;;  %s692_s30 = scalar_lea.vmem %s531_s28, 32 }
  0x15   :  { %vm283_vm2 = vcmp.eq.s32.totalorder %v812_v26, 1  ;;  %p689_p0 = scmp.ne.s32.totalorder %s531_s28, %s688_s29  ;;  %p693_p1 = scmp.lt.s32.totalorder %s531_s28, %s531_s28 }
  0x16   :  { %p694_p2 = scmp.lt.s32.totalorder %s692_s30, %s688_s29 }
  0x18   :  { %p695_p3 = por %p694_p2, %p693_p1 }
  0x1a   :  { %p696_p4 = pnand %p695_p3, %p689_p0 }
  0x1b   :  { %573 = vmatpush3.bf16.xpose.msra.mxu0 %v126_v9  ;;  %601 = vmatpush3.bf16.xpose.msra.mxu1 %v126_v9 }
  0x1c   :  { %614 = vmatprep.subr.msk.bf16.mxu0 %vm103_vm0, %v632_v10  ;;  %615 = vmatprep.subr.msk.bf16.mxu1 %vm103_vm0, %v632_v10 }
  0x23   :  { %575 = vmatpush3.bf16.xpose.msra.mxu0 %v129_v11  ;;  %602 = vmatpush3.bf16.xpose.msra.mxu1 %v129_v11 }
  0x24   :  { %616 = vmatprep.subr.msk.bf16.mxu0 %vm103_vm0, %v633_v12  ;;  %617 = vmatprep.subr.msk.bf16.mxu1 %vm103_vm0, %v633_v12 }
  0x2b   :  { %577 = vmatpush3.bf16.xpose.msra.mxu0 %v132_v13  ;;  %603 = vmatpush3.bf16.xpose.msra.mxu1 %v132_v13 }
  0x2c   :  { %618 = vmatprep.subr.msk.bf16.mxu0 %vm103_vm0, %v634_v14  ;;  %619 = vmatprep.subr.msk.bf16.mxu1 %vm103_vm0, %v634_v14 }
  0x33   :  { %579 = vmatpush3.bf16.xpose.msra.mxu0 %v135_v15  ;;  %604 = vmatpush3.bf16.xpose.msra.mxu1 %v135_v15 }
  0x34   :  { %620 = vmatprep.subr.msk.bf16.mxu0 %vm103_vm0, %v635_v16  ;;  %621 = vmatprep.subr.msk.bf16.mxu1 %vm103_vm0, %v635_v16 }
  0x3b   :  { %581 = vmatpush3.bf16.xpose.msra.mxu0 %v138_v17  ;;  %605 = vmatpush3.bf16.xpose.msra.mxu1 %v138_v17 }
  0x42   :  { %583 = vmatmul.mubr.msk.bf16.vlgmr.msra.gmra.mrb[0].mxu0 %vm103_vm0, %v638_v18  ;;  %587 = vmatmul.mubr.msk.bf16.vlgmr.msra.gmra.mrb[0].mxu1 %vm103_vm0, %v639_v19  ;;  %v934_v19 = vand.u32 127, %v239_v21 }
 0x115   :  { %v584_v27 = vpop.f32.mrb[0].mxu0  ;;  %v588_v28 = vpop.f32.mrb[0].mxu1 }
 0x116   :  { %v174_v29 = vpop.f32.mrb[1].mxu0  ;;  %v314_v30 = vsel %vm283_vm2, %v588_v28, -1e+30  ;;  %v310_v31 = vsel %vm283_vm2, %v584_v27, -1e+30  ;;  %v190_v32 = vpop.f32.mrb[1].mxu1 }
 0x117   :  { %328 = vmax.xlane.f32.xlu0 %v314_v30  ;;  %320 = vmax.xlane.f32.xlu1 %v310_v31  ;;  %v585_v33 = vpop.f32.mrb[2].mxu0  ;;  %v589_v34 = vpop.f32.mrb[2].mxu1  ;;  %v308_v37 = vsel %vm283_vm2, %v174_v29, -1e+30  ;;  %v312_v39 = vsel %vm283_vm2, %v190_v32, -1e+30 }
 0x118   :  { %v177_v35 = vpop.f32.mrb[3].mxu0  ;;  %v193_v36 = vpop.f32.mrb[3].mxu1  ;;  %v311_v38 = vsel %vm283_vm2, %v585_v33, -1e+30  ;;  %v827_v40 = vsel %vm283_vm2, %v589_v34, -1e+30 }
 0x119   :  { %v309_v41 = vsel %vm283_vm2, %v177_v35, -1e+30  ;;  %v855_v49 = vsel %vm283_vm2, %v193_v36, -1e+30  ;;  %v254_v27 = vadd.s32 16, %v809_v23  ;;  %v714_v33 = vmov 0.0  }
 0x11a   :  { %v258_v35 = vadd.s32 48, %v809_v23 }
 0x11b   :  { %316 = vmax.xlane.f32.xlu0 %v308_v37  ;;  %322 = vmax.xlane.f32.xlu1 %v311_v38 }
 0x11f   :  { %324 = vmax.xlane.f32.xlu0 %v312_v39  ;;  %330 = vmax.xlane.f32.xlu1 %v827_v40 }
 0x123   :  { %318 = vmax.xlane.f32.xlu0 %v309_v41 }
 0x130   :  { %219 = vperm.xlu1 %627, %v206_v42  }
 0x134   :  { %222 = vperm.xlu1 %627, %v207_v43  }
 0x138   :  { %225 = vperm.xlu1 %627, %v208_v44  }
 0x139   :  { %216 = vperm.xlu0 %626, %v205_v45  }
 0x13c   :  { %228 = vperm.xlu1 %627, %v209_v46  }
 0x140   :  { %231 = vperm.xlu1 %627, %v210_v47  }
 0x144   :  { %234 = vperm.xlu1 %627, %v211_v48  }
 0x168   :  { %326 = vmax.xlane.f32.xlu1 %v855_v49 }
 0x179   :  { %237 = vperm.xlu1 %627, %v212_v50   ;;  %v253_v50 = vadd.s32 8, %v809_v23 }
 0x1a4   :  { %v329_v51 = vpop.xlane.xlu0 %328  ;;  %v321_v52 = vpop.xlane.xlu1 %320 }
 0x1a5   :  { %v867_v60 = vsub.f32 %v310_v31, %v321_v52  ;;  %v886_v8 = vsub.f32 %v314_v30, %v329_v51  ;;  %v256_v30 = vadd.s32 32, %v809_v23 }
 0x1a7   :  { %v344_v3 = vmul.f32 1.442695, %v867_v60  ;;  %v352_v11 = vmul.f32 1.442695, %v886_v8 }
 0x1a8   :  { %v317_v53 = vpop.xlane.xlu0 %316  ;;  %v323_v54 = vpop.xlane.xlu1 %322 }
 0x1a9   :  { %v863_v57 = vsub.f32 %v308_v37, %v317_v53  ;;  %v872_v63 = vsub.f32 %v311_v38, %v323_v54  ;;  %v257_v53 = vadd.s32 40, %v809_v23 }
 0x1ab   :  { %v340_v62 = vmul.f32 1.442695, %v863_v57  ;;  %v346_v5 = vmul.f32 1.442695, %v872_v63 }
 0x1ac   :  { %v325_v55 = vpop.xlane.xlu0 %324  ;;  %v861_v56 = vpop.xlane.xlu1 %330 }
 0x1ad   :  { %v878_v4 = vsub.f32 %v312_v39, %v325_v55  ;;  %v1006_v44 = vsub.f32 %v827_v40, %v861_v56  ;;  %v1052_v56 = vadd.s32 56, %v809_v23 }
 0x1af   :  { %v348_v9 = vmul.f32 1.442695, %v878_v4  ;;  %v354_v47 = vmul.f32 1.442695, %v1006_v44 }
 0x1b0   :  { %v865_v58 = vpop.permute.xlu1 %219  ;;  %v319_v59 = vpop.xlane.xlu0 %318 }
 0x1b1   :  { %v869_v61 = vsub.f32 %v309_v41, %v319_v59  ;;  %vm244_vm3 = vcmp.eq.s32.totalorder %v865_v58, %v874_v0 }
 0x1b2   :  { %vm293_vm6 = vmxor %vm244_vm3, %vm713_vm5 }
 0x1b3   :  { %v342_v1 = vmul.f32 1.442695, %v869_v61  ;;  %vm301_vm10 = vmand %vm293_vm6, %vm283_vm2  ;;  %vm262_vm6 = vcmp.ne.s32.totalorder %v809_v23, %v934_v19 }
 0x1b4   :  { %v223_v2 = vpop.permute.xlu1 %222 }
 0x1b5   :  { %640 = vpow2.f32 %v342_v1  ;;  %vm245_vm4 = vcmp.eq.s32.totalorder %v223_v2, %v874_v0 }
 0x1b6   :  { %642 = vpow2.f32 %v340_v62  ;;  %vm294_vm8 = vmxor %vm245_vm4, %vm713_vm5 }
 0x1b7   :  { %644 = vpow2.f32 %v344_v3  ;;  %vm908_vm13 = vmand %vm294_vm8, %vm283_vm2 }
 0x1b8   :  { %v884_v6 = vpop.permute.xlu1 %225  ;;  %v217_v7 = vpop.permute.xlu0 %216  ;;  %646 = vpow2.f32 %v346_v5 }
 0x1b9   :  { %vm243_vm7 = vcmp.eq.s32.totalorder %v217_v7, %v874_v0  ;;  %vm246_vm9 = vcmp.eq.s32.totalorder %v884_v6, %v874_v0  ;;  %648 = vpow2.f32 %v348_v9 }
 0x1ba   :  { %vm292_vm11 = vmxor %vm243_vm7, %vm713_vm5  ;;  %650 = vpow2.f32 %v352_v11 }
 0x1bb   :  { %vm295_vm14 = vmxor %vm246_vm9, %vm713_vm5 }
 0x1bc   :  { %v229_v10 = vpop.permute.xlu1 %228  ;;  %vm300_vm15 = vmand %vm292_vm11, %vm283_vm2 }
 0x1bd   :  { %vm247_vm12 = vcmp.eq.s32.totalorder %v229_v10, %v874_v0  ;;  %vm303_vm1 = vmand %vm295_vm14, %vm283_vm2 }
 0x1be   :  { %vm296_vm0 = vmxor %vm247_vm12, %vm713_vm5 }
 0x1bf   :  { %v912_v13 = vpop.eup %640 }
 0x1c0   :  { %v918_v14 = vpop.eup %642  ;;  %v922_v15 = vpop.permute.xlu1 %231  ;;  %v357_v16 = vsel %vm301_vm10, %v912_v13, 0.0  ;;  %vm304_vm10 = vmand %vm296_vm0, %vm283_vm2 }
 0x1c1   :  { %v356_v17 = vsel %vm300_vm15, %v918_v14, 0.0  ;;  %366 = vadd.xlane.f32.xlu0 %v357_v16  ;;  %v931_v18 = vpop.eup %644  ;;  %vm264_vm15 = vcmp.ne.s32.totalorder %v254_v27, %v934_v19 }
 0x1c2   :  { %364 = vadd.xlane.f32.xlu1 %v356_v17  ;;  %v936_v20 = vpop.eup %646  ;;  %v358_v24 = vsel %vm908_vm13, %v931_v18, 0.0  ;;  %vm270_vm13 = vmand %vm243_vm7, %vm262_vm6 }
 0x1c3   :  { %v359_v25 = vsel %vm303_vm1, %v936_v20, 0.0  ;;  %v947_v21 = vpop.eup %648  ;;  %vm964_vm0 = vmand %vm270_vm13, %vm283_vm2  ;;  %vm266_vm1 = vcmp.ne.s32.totalorder %v256_v30, %v934_v19 }
 0x1c4   :  { %v235_v22 = vpop.permute.xlu1 %234  ;;  %v360_v28 = vsel %vm304_vm10, %v947_v21, 0.0  ;;  %v958_v29 = vpop.eup %650  ;;  %vm272_vm7 = vmand %vm245_vm4, %vm264_vm15  ;;  %v436_v34 = vsel %vm964_vm0, 1.0, %v714_v33  ;;  %vm268_vm4 = vcmp.ne.s32.totalorder %v258_v35, %v934_v19 }
 0x1c5   :  { %vm249_vm8 = vcmp.eq.s32.totalorder %v235_v22, %v874_v0  ;;  %368 = vadd.xlane.f32.xlu0 %v358_v24  ;;  %vm977_vm6 = vmand %vm272_vm7, %vm283_vm2 }
 0x1c6   :  { %370 = vadd.xlane.f32.xlu1 %v359_v25  ;;  %vm298_vm11 = vmxor %vm249_vm8, %vm713_vm5  ;;  %v438_v37 = vsel %vm977_vm6, 1.0, %v714_v33 }
 0x1c7   :  { %vm306_vm14 = vmand %vm298_vm11, %vm283_vm2 }
 0x1c8   :  { %v362_v32 = vsel %vm306_vm14, %v958_v29, 0.0  ;;  %vm274_vm10 = vmand %vm247_vm12, %vm266_vm1  ;;  %vm263_vm1 = vcmp.ne.s32.totalorder %v253_v50, %v934_v19 }
 0x1c9   :  { %372 = vadd.xlane.f32.xlu0 %v360_v28  ;;  %vm988_vm11 = vmand %vm274_vm10, %vm283_vm2 }
 0x1ca   :  { %vm276_vm13 = vmand %vm249_vm8, %vm268_vm4  ;;  %v440_v39 = vsel %vm988_vm11, 1.0, %v714_v33  ;;  %vm248_vm8 = vcmp.eq.s32.totalorder %v922_v15, %v874_v0 }
 0x1cb   :  { %vm998_vm12 = vmand %vm276_vm13, %vm283_vm2 }
 0x1cc   :  { %v442_v42 = vsel %vm998_vm12, 1.0, %v714_v33  ;;  %vm297_vm15 = vmxor %vm248_vm8, %vm713_vm5 }
 0x1cd   :  { %376 = vadd.xlane.f32.xlu0 %v362_v32  ;;  %vm305_vm10 = vmand %vm297_vm15, %vm283_vm2 }
 0x1ce   :  { %vm271_vm13 = vmand %vm244_vm3, %vm263_vm1  ;;  %vm267_vm3 = vcmp.ne.s32.totalorder %v257_v53, %v934_v19 }
 0x1cf   :  { %vm1043_vm15 = vmand %vm271_vm13, %vm283_vm2 }
 0x1d0   :  { %v437_v58 = vsel %vm1043_vm15, 1.0, %v714_v33 }
 0x1d1   :  { %444 = vadd.xlane.f32.xlu0 %v436_v34 }
 0x1d5   :  { %448 = vadd.xlane.f32.xlu0 %v438_v37 }
 0x1d9   :  { %452 = vadd.xlane.f32.xlu0 %v440_v39 }
 0x1dd   :  { %456 = vadd.xlane.f32.xlu0 %v442_v42 }
 0x1f5   :  { %v327_v43 = vpop.xlane.xlu1 %326 }
 0x1f6   :  { %v1009_v45 = vsub.f32 %v855_v49, %v327_v43  ;;  %v255_v49 = vadd.s32 24, %v809_v23 }
 0x1f8   :  { %v350_v46 = vmul.f32 1.442695, %v1009_v45 }
 0x1f9   :  { %v238_v48 = vpop.permute.xlu1 %237 }
 0x1fa   :  { %652 = vpow2.f32 %v350_v46  ;;  %vm250_vm14 = vcmp.eq.s32.totalorder %v238_v48, %v874_v0 }
 0x1fb   :  { %654 = vpow2.f32 %v354_v47  ;;  %vm299_vm7 = vmxor %vm250_vm14, %vm713_vm5  ;;  %vm265_vm5 = vcmp.ne.s32.totalorder %v255_v49, %v934_v19 }
 0x1fc   :  { %vm307_vm4 = vmand %vm299_vm7, %vm283_vm2 }
 0x1fd   :  { %vm273_vm7 = vmand %vm246_vm9, %vm265_vm5  ;;  %vm269_vm9 = vcmp.ne.s32.totalorder %v1052_v56, %v934_v19 }
 0x1fe   :  { %vm1058_vm1 = vmand %vm273_vm7, %vm283_vm2 }
 0x1ff   :  { %v439_v23 = vsel %vm1058_vm1, 1.0, %v714_v33  ;;  %vm277_vm13 = vmand %vm250_vm14, %vm269_vm9 }
 0x204   :  { %v1024_v40 = vpop.eup %652 }
 0x205   :  { %v361_v51 = vsel %vm305_vm10, %v1024_v40, 0.0  ;;  %v1036_v52 = vpop.eup %654  ;;  %vm275_vm10 = vmand %vm248_vm8, %vm267_vm3 }
 0x206   :  { %374 = vadd.xlane.f32.xlu1 %v361_v51  ;;  %v363_v54 = vsel %vm307_vm4, %v1036_v52, 0.0  ;;  %vm1071_vm4 = vmand %vm275_vm10, %vm283_vm2 }
 0x207   :  { %v441_v1 = vsel %vm1071_vm4, 1.0, %v714_v33  ;;  %vm1081_vm8 = vmand %vm277_vm13, %vm283_vm2  ;;  %vm499_vm2 = vcmp.lt.s32.totalorder %v1052_v56, 60 }
 0x208   :  { %v443_v3 = vsel %vm1081_vm8, 1.0, %v714_v33 }
 0x20a   :  { %378 = vadd.xlane.f32.xlu1 %v363_v54 }
 0x20e   :  { %446 = vadd.xlane.f32.xlu1 %v437_v58 }
 0x212   :  { %450 = vadd.xlane.f32.xlu1 %v439_v23 }
 0x216   :  { %454 = vadd.xlane.f32.xlu1 %v441_v1 }
 0x21a   :  { %458 = vadd.xlane.f32.xlu1 %v443_v3 }
 0x24e   :  { %v367_v5 = vpop.xlane.xlu0 %366 }
 0x24f   :  { %v365_v6 = vpop.xlane.xlu1 %364  ;;  %v381_v7 = vadd.f32 %v912_v13, %v367_v5 }
 0x250   :  { %v380_v0 = vadd.f32 %v918_v14, %v365_v6 }
 0x251   :  { %656 = vlog2.f32 %v381_v7 }
 0x252   :  { %658 = vlog2.f32 %v380_v0  ;;  %v369_v9 = vpop.xlane.xlu0 %368 }
 0x253   :  { %v371_v10 = vpop.xlane.xlu1 %370  ;;  %v382_v26 = vadd.f32 %v931_v18, %v369_v9 }
 0x254   :  { %v383_v11 = vadd.f32 %v936_v20, %v371_v10 }
 0x255   :  { %660 = vlog2.f32 %v382_v26 }
 0x256   :  { %662 = vlog2.f32 %v383_v11  ;;  %v373_v12 = vpop.xlane.xlu0 %372 }
 0x257   :  { %v384_v15 = vadd.f32 %v947_v21, %v373_v12 }
 0x259   :  { %664 = vlog2.f32 %v384_v15 }
 0x25a   :  { %v377_v16 = vpop.xlane.xlu0 %376 }
 0x25b   :  { %v657_v17 = vpop.eup %656  ;;  %v386_v13 = vadd.f32 %v958_v29, %v377_v16 }
 0x25c   :  { %v659_v19 = vpop.eup %658  ;;  %v391_v14 = vmul.f32 0.6931472, %v657_v17 }
 0x25d   :  { %v389_v22 = vmul.f32 0.6931472, %v659_v19  ;;  %666 = vlog2.f32 %v386_v13 }
 0x25e   :  { %v405_v24 = vsub.f32 %v869_v61, %v391_v14  ;;  %v445_v49 = vpop.xlane.xlu0 %444 }
 0x25f   :  { %v661_v25 = vpop.eup %660  ;;  %v404_v18 = vsub.f32 %v863_v57, %v389_v22  ;;  %v460_v58 = vmax.f32 %v445_v49, 1.0 }
 0x260   :  { %v663_v20 = vpop.eup %662  ;;  %v393_v27 = vmul.f32 0.6931472, %v661_v25  ;;  %v413_v28 = vsel %vm1043_vm15, %v405_v24, 0.0 }
 0x261   :  { %v395_v21 = vmul.f32 0.6931472, %v663_v20  ;;  %v412_v30 = vsel %vm964_vm0, %v404_v18, 0.0  ;;  %422 = vadd.xlane.f32.xlu1 %v413_v28  ;;  %vm522_vm0 = vcmask 0  }
 0x262   :  { %420 = vadd.xlane.f32.xlu0 %v412_v30  ;;  %v406_v29 = vsub.f32 %v867_v60, %v393_v27 }
 0x263   :  { %v665_v32 = vpop.eup %664  ;;  %v407_v33 = vsub.f32 %v872_v63, %v395_v21 }
 0x264   :  { %v397_v61 = vmul.f32 0.6931472, %v665_v32  ;;  %v414_v57 = vsel %vm977_vm6, %v406_v29, 0.0 }
 0x265   :  { %v415_v34 = vsel %vm1058_vm1, %v407_v33, 0.0 }
 0x266   :  { %426 = vadd.xlane.f32.xlu1 %v415_v34  ;;  %424 = vadd.xlane.f32.xlu0 %v414_v57  ;;  %v408_v35 = vsub.f32 %v878_v4, %v397_v61 }
 0x267   :  { %v667_v31 = vpop.eup %666 }
 0x268   :  { %v401_v37 = vmul.f32 0.6931472, %v667_v31  ;;  %v416_v39 = vsel %vm988_vm11, %v408_v35, 0.0 }
 0x26a   :  { %428 = vadd.xlane.f32.xlu0 %v416_v39  ;;  %v410_v60 = vsub.f32 %v886_v8, %v401_v37 }
 0x26c   :  { %v418_v63 = vsel %vm998_vm12, %v410_v60, 0.0 }
 0x26e   :  { %432 = vadd.xlane.f32.xlu0 %v418_v63 }
 0x293   :  { %v375_v36 = vpop.xlane.xlu1 %374 }
 0x294   :  { %v385_v42 = vadd.f32 %v1024_v40, %v375_v36 }
 0x296   :  { %668 = vlog2.f32 %v385_v42 }
 0x297   :  { %v379_v43 = vpop.xlane.xlu1 %378 }
 0x298   :  { %v387_v46 = vadd.f32 %v1036_v52, %v379_v43  ;;  %v449_v52 = vpop.xlane.xlu0 %448 }
 0x29a   :  { %670 = vlog2.f32 %v387_v46 }
 0x29b   :  { %v447_v51 = vpop.xlane.xlu1 %446 }
 0x29c   :  { %v453_v54 = vpop.xlane.xlu0 %452  ;;  %v461_v55 = vmax.f32 %v447_v51, 1.0 }
 0x29e   :  { %672 = vrcp.f32 %v461_v55 }
 0x29f   :  { %v451_v53 = vpop.xlane.xlu1 %450  ;;  %674 = vrcp.f32 %v460_v58 }
 0x2a0   :  { %v669_v4 = vpop.eup %668  ;;  %v457_v23 = vpop.xlane.xlu0 %456  ;;  %v463_v62 = vmax.f32 %v451_v53, 1.0 }
 0x2a1   :  { %v399_v47 = vmul.f32 0.6931472, %v669_v4  ;;  %v466_v0 = vmax.f32 %v457_v23, 1.0 }
 0x2a3   :  { %v409_v38 = vsub.f32 %v1009_v45, %v399_v47  ;;  %v462_v45 = vmax.f32 %v449_v52, 1.0  ;;  %v455_v59 = vpop.xlane.xlu1 %454 }
 0x2a4   :  { %v671_v48 = vpop.eup %670  ;;  %v465_v26 = vmax.f32 %v455_v59, 1.0 }
 0x2a5   :  { %v403_v50 = vmul.f32 0.6931472, %v671_v48  ;;  %v417_v8 = vsel %vm1071_vm4, %v409_v38, 0.0  ;;  %676 = vrcp.f32 %v462_v45 }
 0x2a6   :  { %430 = vadd.xlane.f32.xlu1 %v417_v8  ;;  %678 = vrcp.f32 %v463_v62 }
 0x2a7   :  { %v411_v41 = vsub.f32 %v1006_v44, %v403_v50  ;;  %v459_v1 = vpop.xlane.xlu1 %458  ;;  %v464_v44 = vmax.f32 %v453_v54, 1.0 }
 0x2a8   :  { %v673_v5 = vpop.eup %672  ;;  %v467_v16 = vmax.f32 %v459_v1, 1.0 }
 0x2a9   :  { %v419_v40 = vsel %vm1081_vm8, %v411_v41, 0.0  ;;  %680 = vrcp.f32 %v464_v44  ;;  %v675_v7 = vpop.eup %674 }
 0x2aa   :  { %434 = vadd.xlane.f32.xlu1 %v419_v40  ;;  %682 = vrcp.f32 %v466_v0 }
 0x2ab   :  { %684 = vrcp.f32 %v465_v26 }
 0x2ac   :  { %686 = vrcp.f32 %v467_v16 }
 0x2af   :  { %v677_v10 = vpop.eup %676 }
 0x2b0   :  { %v679_v14 = vpop.eup %678 }
 0x2b3   :  { %v681_v18 = vpop.eup %680 }
 0x2b4   :  { %v683_v30 = vpop.eup %682 }
 0x2b5   :  { %v685_v33 = vpop.eup %684 }
 0x2b6   :  { %v687_v37 = vpop.eup %686 }
 0x2ee   :  { %v423_v2 = vpop.xlane.xlu1 %422 }
 0x2ef   :  { %v421_v3 = vpop.xlane.xlu0 %420  ;;  %v471_v9 = vmul.f32 %v673_v5, %v423_v2 }
 0x2f0   :  { %v469_v11 = vmul.f32 %v675_v7, %v421_v3 }
 0x2f1   :  { %v485_v15 = vmul.f32 -1.4285715, %v471_v9 }
 0x2f2   :  { %v484_v13 = vmul.f32 -1.4285715, %v469_v11 }
 0x2f3   :  { %v425_v6 = vpop.xlane.xlu0 %424  ;;  %v427_v17 = vpop.xlane.xlu1 %426 }
 0x2f4   :  { %v473_v12 = vmul.f32 %v677_v10, %v425_v6  ;;  %v508_v24 = vadd.f32 %v485_v15, %v484_v13  ;;  %v475_v25 = vmul.f32 %v679_v14, %v427_v17 }
 0x2f6   :  { %v486_v19 = vmul.f32 -1.4285715, %v473_v12  ;;  %v487_v28 = vmul.f32 -1.4285715, %v475_v25 }
 0x2f7   :  { %v429_v22 = vpop.xlane.xlu0 %428 }
 0x2f8   :  { %v509_v20 = vadd.f32 %v508_v24, %v486_v19  ;;  %v477_v27 = vmul.f32 %v681_v18, %v429_v22 }
 0x2fa   :  { %v510_v29 = vadd.f32 %v509_v20, %v487_v28  ;;  %v488_v32 = vmul.f32 -1.4285715, %v477_v27 }
 0x2fb   :  { %v433_v21 = vpop.xlane.xlu0 %432 }
 0x2fc   :  { %v481_v57 = vmul.f32 %v683_v30, %v433_v21  ;;  %v511_v35 = vadd.f32 %v510_v29, %v488_v32 }
 0x2fe   :  { %v490_v60 = vmul.f32 -1.4285715, %v481_v57 }
 0x333   :  { %v431_v61 = vpop.xlane.xlu1 %430 }
 0x334   :  { %v479_v34 = vmul.f32 %v685_v33, %v431_v61 }
 0x336   :  { %v489_v31 = vmul.f32 -1.4285715, %v479_v34 }
 0x337   :  { %v435_v39 = vpop.xlane.xlu1 %434 }
 0x338   :  { %v512_v63 = vadd.f32 %v511_v35, %v489_v31  ;;  %v483_v36 = vmul.f32 %v687_v37, %v435_v39 }
 0x33a   :  { %v513_v42 = vadd.f32 %v512_v63, %v490_v60  ;;  %v491_v43 = vmul.f32 -1.4285715, %v483_v36 }
 0x33c   :  { %v507_v46 = vsel %vm499_vm2, %v491_v43, 0.0 }
 0x33d   :  { %v514_v4 = vadd.f32 %v513_v42, %v507_v46 }
 0x33f   :  { %v515_v47 = vrot.slane %v514_v4, 4 }
 0x341   :  { %v516_v38 = vadd.f32 %v515_v47, %v514_v4 }
 0x343   :  { %v517_v48 = vrot.slane %v516_v38, 2 }
 0x345   :  { %v518_v50 = vadd.f32 %v517_v48, %v516_v38 }
 0x347   :  { %v519_v8 = vrot.slane %v518_v50, 1 }
 0x349   :  { %v520_v41 = vadd.f32 %v519_v8, %v518_v50 }
 0x34b   :  { %v521_v40 = vmul.f32 0.016666668, %v520_v41 }
 0x34d   :  { %523 = vst.msk [vmem:[#allocation2] sm:$0x1] %vm522_vm0, %v521_v40 }
 0x34e   :  { %699 = shalt.err (!%p696_p4)
}
 0x34f   :  { %s700_s7 = scalar_lea.hbm %s1136_s4, 16 }
 0x350   :  { %p701_p5 = scmp.ne.s32.totalorder %s1136_s4, %s700_s7  ;;  %p704_p6 = scmp.lt.u32.totalorder %s700_s7, %s1136_s4 }
 0x352   :  { %p706_p7 = pnand %p704_p6, %p701_p5 }
 0x354   :  { %709 = shalt.err (!%p706_p7)
}
 0x355   :  { %533 = dma.vmem_to_hbm [thread:$0]  %s531_s28, 16, %s1136_s4, [#allocation3]  }
 0x356   :  { %710 = dma.done.wait [#allocation3], 16  }
 0x357   :  { %711 = vsyncadd [#allocation3], 4294967280 }
 0x358   :  { %537 = vsyncpa [#allocation3], 1 }

</bundles_post_ra>
